<compile_context>
chip_gen: v7x
topology: tpu7x:2x2x1
jax: 0.10.0
libtpu: 0.0.40
codegen_flags: <defaults>
</compile_context>

<pallas_src>
import math
import functools

import jax
import jax.numpy as jnp
from jax.experimental import pallas as pl
from jax.experimental.pallas import tpu as pltpu


D_MODEL = 32
MAX_LEN = 7
DROPOUT_P = 0.1

# Per-operand block budget.  With up to 3 operands + 1 output, each double-buffered,
# peak VMEM stays ~<32 MiB -> safe on v7x (64 MiB physical) and trivially on v5e/v6e.
_BLOCK_BYTES_BUDGET = 4 * 1024 * 1024


def make_positional_encoding(d_model: int, max_len: int) -> jnp.ndarray:
    """Deterministic pe buffer, shape (max_len, 1, d_model), identical to the torch init."""
    position = jnp.arange(0, max_len, dtype=jnp.float32)[:, None]                  # (L, 1)
    div_term = jnp.exp(jnp.arange(0, d_model, 2, dtype=jnp.float32)
                       * (-math.log(10000.0) / d_model))                           # (D/2,)
    pe_even = jnp.sin(position * div_term)                                         # (L, D/2)
    pe_odd = jnp.cos(position * div_term)                                          # (L, D/2)
    pe = jnp.zeros((max_len, d_model), dtype=jnp.float32)
    pe = pe.at[:, 0::2].set(pe_even)
    pe = pe.at[:, 1::2].set(pe_odd)
    return pe[:, None, :]                                                          # (L, 1, D)


def _pe_add_kernel(x_ref, pe_ref, o_ref):
    # Eval path: plain elementwise add on a lane-dense (tile_s, B*D) block.
    o_ref[...] = x_ref[...] + pe_ref[...]


def _pe_add_dropout_kernel(x_ref, pe_ref, bits_ref, o_ref, *, threshold: int, scale: float):
    # Training path: add + inverted dropout via integer-threshold mask, one select.
    y = x_ref[...] + pe_ref[...]
    keep = bits_ref[...] >= jnp.uint32(threshold)          # P(keep) = 1 - p
    o_ref[...] = jnp.where(keep, y * scale, 0.0)


def _choose_tile_s(seq_len: int, row_bytes: int) -> int:
    tile = _BLOCK_BYTES_BUDGET // max(row_bytes, 1)
    if tile >= seq_len:
        return seq_len                        # single block covers the whole sequence
    return max(8, (tile // 8) * 8)            # keep sublane rows a multiple of 8


def positional_encoding_forward(x: jnp.ndarray,
                                pe: jnp.ndarray,
                                *,
                                key=None,
                                training: bool = False,
                                p: float = DROPOUT_P) -> jnp.ndarray:
    """x: (S, B, D); pe: (max_len, 1, D). Returns dropout(x + pe[:S]) with shape (S, B, D)."""
    S, B, D = x.shape
    BD = B * D

    # Lane-dense views: last dim is B*D (128 for the default config -> full-lane stores).
    x2 = x.reshape(S, BD)
    pe2 = jnp.broadcast_to(pe[:S], (S, B, D)).reshape(S, BD).astype(x.dtype)

    tile_s = _choose_tile_s(S, BD * x.dtype.itemsize)
    grid = (pl.cdiv(S, tile_s),)
    blk = pl.BlockSpec((tile_s, BD), lambda i: (i, 0))

    compiler_params = pltpu.CompilerParams(
        dimension_semantics=("parallel",),        # shard seq blocks across v7x's 2 TCs
        vmem_limit_bytes=64 * 1024 * 1024,
    )

    if training and p > 0.0:
        if key is None:
            key = jax.random.PRNGKey(0)
        bits = jax.random.bits(key, (S, BD), dtype=jnp.uint32)
        kernel = functools.partial(
            _pe_add_dropout_kernel,
            threshold=int(round(p * 2.0 ** 32)),
            scale=1.0 / (1.0 - p),
        )
        out2 = pl.pallas_call(
            kernel,
            out_shape=jax.ShapeDtypeStruct((S, BD), x.dtype),
            grid=grid,
            in_specs=[blk, blk, blk],
            out_specs=blk,
            compiler_params=compiler_params,
        )(x2, pe2, bits)
    else:
        out2 = pl.pallas_call(
            _pe_add_kernel,
            out_shape=jax.ShapeDtypeStruct((S, BD), x.dtype),
            grid=grid,
            in_specs=[blk, blk],
            out_specs=blk,
            compiler_params=compiler_params,
        )(x2, pe2)

    return out2.reshape(S, B, D)


if __name__ == "__main__":
    key = jax.random.PRNGKey(0)
    kx, kdrop = jax.random.split(key)

    S, B, D = MAX_LEN, 4, D_MODEL                    # seq=7, batch=4, d_model=32
    x = jax.random.normal(kx, (S, B, D), dtype=jnp.float32)
    pe = make_positional_encoding(D_MODEL, MAX_LEN)

    # Eval-mode forward (dropout inactive) — must match the reference exactly.
    out_eval = jax.block_until_ready(positional_encoding_forward(x, pe, training=False))
    ref_eval = x + pe[:S]
    assert jnp.allclose(out_eval, ref_eval, atol=1e-6), "eval-mode mismatch"

    # Training-mode forward (inverted dropout, p=0.1) — verify against the same mask.
    out_train = jax.block_until_ready(
        positional_encoding_forward(x, pe, key=kdrop, training=True))
    bits = jax.random.bits(kdrop, (S, B * D), dtype=jnp.uint32).reshape(S, B, D)
    keep = bits >= jnp.uint32(int(round(DROPOUT_P * 2.0 ** 32)))
    ref_train = jnp.where(keep, (x + pe[:S]) * (1.0 / (1.0 - DROPOUT_P)), 0.0)
    assert jnp.allclose(out_train, ref_train, atol=1e-6), "train-mode mismatch"

    print("KERNEL_OK")
</pallas_src>

<mosaic_0001>
module attributes {stable_mosaic.version = 11 : i64} {
  func.func @_pe_add_kernel(%arg0: i32, %arg1: memref<7x128xf32, #tpu.memory_space<vmem>>, %arg2: memref<7x128xf32, #tpu.memory_space<vmem>>, %arg3: memref<7x128xf32, #tpu.memory_space<vmem>>) attributes {dimension_semantics = [#tpu.dimension_semantics<parallel>], iteration_bounds = array<i64: 1>, scalar_prefetch = 0 : i64, scratch_operands = 0 : i64, tpu.core_type = #tpu.core_type<tc>, window_params = [{transform_indices = @transform_0, window_bounds = array<i64: 7, 128>}, {transform_indices = @transform_1, window_bounds = array<i64: 7, 128>}, {transform_indices = @transform_2, window_bounds = array<i64: 7, 128>}]} {
    %c0 = arith.constant 0 : index
    %c0_0 = arith.constant 0 : index
    %0 = vector.load %arg1[%c0, %c0_0] : memref<7x128xf32, #tpu.memory_space<vmem>>, vector<7x128xf32>
    %c0_1 = arith.constant 0 : index
    %c0_2 = arith.constant 0 : index
    %1 = vector.load %arg2[%c0_1, %c0_2] : memref<7x128xf32, #tpu.memory_space<vmem>>, vector<7x128xf32>
    %2 = arith.addf %0, %1 : vector<7x128xf32>
    %c0_3 = arith.constant 0 : index
    %c0_4 = arith.constant 0 : index
    %3 = vector.load %arg3[%c0_3, %c0_4] : memref<7x128xf32, #tpu.memory_space<vmem>>, vector<7x128xf32>
    tpu.vector_store %arg3[%c0_3, %c0_4], %2 {strides = array<i32>} : memref<7x128xf32, #tpu.memory_space<vmem>>, vector<7x128xf32>,
    return
  }
  func.func @transform_0(%arg0: i32) -> (i32, i32) {
    %c0_i32 = arith.constant 0 : i32
    %c0_i32_0 = arith.constant 0 : i32
    return %arg0, %c0_i32 : i32, i32
  }
  func.func @transform_1(%arg0: i32) -> (i32, i32) {
    %c0_i32 = arith.constant 0 : i32
    %c0_i32_0 = arith.constant 0 : i32
    return %arg0, %c0_i32 : i32, i32
  }
  func.func @transform_2(%arg0: i32) -> (i32, i32) {
    %c0_i32 = arith.constant 0 : i32
    %c0_i32_0 = arith.constant 0 : i32
    return %arg0, %c0_i32 : i32, i32
  }
}

</mosaic_0001>

<bundles_post_ra>
// kernel: tpu_custom_call.1
= control target key start
LH: loop header
LB: loop body
LE: loop exit
PB: predicated region body
PF: predicated region fallthrough
CT: control target
= control target key end

     0   :  { %7 = vsyncpa [#allocation3], 0  ;;  %s185_s0 = inlined_call_operand.hbm [shape: f32[7,128], index: 0, kind: input, shape index: {}]   ;;  %s186_s1 = inlined_call_operand.hbm [shape: f32[7,128], index: 1, kind: input, shape index: {}]   ;;  %s187_s2 = inlined_call_operand.hbm [shape: f32[7,128], index: 2, kind: output, shape index: {}]  }
   0x1   :  { %8 = vsyncpa [#allocation6], 0 }
   0x2   :  { %9 = vsyncpa [#allocation4], 0  ;;  %s131_s9 = smov [#allocation2]   ;;  %s132_s11 = smov [#allocation5]  }
   0x3   :  { %s16_s10 = sshll.u32 %s131_s9, 4  ;;  %s26_s12 = sshll.u32 %s132_s11, 4  ;;  %s17_s10 = int_to_ptr.vmem [resolvable:$true] %s16_s10  ;;  %s27_s12 = int_to_ptr.vmem [resolvable:$true] %s26_s12 }
   0x4   :  { %s59_s15 = scalar_lea.hbm %s185_s0, 128 }
   0x5   :  { %p60_p0 = scmp.ne.s32.totalorder %s185_s0, %s59_s15  ;;  %p63_p1 = scmp.lt.u32.totalorder %s59_s15, %s185_s0 }
   0x7   :  { %p65_p2 = pnand %p63_p1, %p60_p0 }
   0x9   :  { %68 = shalt.err (!%p65_p2)
}
   0xa   :  { %s69_s20 = scalar_lea.vmem %s17_s10, 128  ;;  %p74_p4 = scmp.lt.s32.totalorder %s17_s10, %s17_s10 }
   0xb   :  { %p70_p3 = scmp.ne.s32.totalorder %s17_s10, %s69_s20  ;;  %p75_p5 = scmp.lt.s32.totalorder %s69_s20, %s69_s20 }
   0xd   :  { %p76_p6 = por %p75_p5, %p74_p4 }
   0xf   :  { %p77_p7 = pnand %p76_p6, %p70_p3 }
  0x11   :  { %80 = shalt.err (!%p77_p7)
}
  0x12   :  { %19 = dma.hbm_to_vmem [thread:$0]  %s185_s0, 128, %s17_s10, [#allocation3]  }
  0x13   :  { %s81_s25 = scalar_lea.hbm %s186_s1, 128 }
  0x14   :  { %p82_p8 = scmp.ne.s32.totalorder %s186_s1, %s81_s25  ;;  %p85_p9 = scmp.lt.u32.totalorder %s81_s25, %s186_s1 }
  0x16   :  { %p87_p10 = pnand %p85_p9, %p82_p8 }
  0x18   :  { %90 = shalt.err (!%p87_p10)
}
  0x19   :  { %s91_s30 = scalar_lea.vmem %s27_s12, 128  ;;  %p96_p12 = scmp.lt.s32.totalorder %s27_s12, %s27_s12 }
  0x1a   :  { %p92_p11 = scmp.ne.s32.totalorder %s27_s12, %s91_s30  ;;  %p97_p13 = scmp.lt.s32.totalorder %s91_s30, %s91_s30 }
  0x1c   :  { %p98_p0 = por %p97_p13, %p96_p12 }
  0x1e   :  { %p99_p1 = pnand %p98_p0, %p92_p11 }
  0x20   :  { %102 = shalt.err (!%p99_p1)
}
  0x21   :  { %29 = dma.hbm_to_vmem [thread:$0]  %s186_s1, 128, %s27_s12, [#allocation6]  }
  0x22   :  { %125 = dma.done.wait [#allocation3], 128  }
  0x23   :  { %126 = vsyncadd [#allocation3], 4294967168 }
  0x24   :  { %127 = dma.done.wait [#allocation6], 128  }
  0x25   :  { %128 = vsyncadd [#allocation6], 4294967168  ;;  %s133_s4 = smov [#allocation7]   ;;  %v36_v0 = vld [vmem:[#allocation2] sm:$0x7f] }
  0x26   :  { %s46_s5 = sshll.u32 %s133_s4, 4  ;;  %v37_v1 = vld [vmem:[#allocation5] sm:$0x7f]  ;;  %s47_s5 = int_to_ptr.vmem [resolvable:$true] %s46_s5 }
  0x27   :  { %v38_v2 = vadd.f32 %v37_v1, %v36_v0  ;;  %s103_s6 = scalar_lea.vmem %s47_s5, 128  ;;  %p108_p3 = scmp.lt.s32.totalorder %s47_s5, %s47_s5 }
  0x28   :  { %p104_p2 = scmp.ne.s32.totalorder %s47_s5, %s103_s6  ;;  %p109_p4 = scmp.lt.s32.totalorder %s103_s6, %s103_s6 }
  0x29   :  { %39 = vst [vmem:[#allocation7] sm:$0x7f] %v38_v2 }
  0x2a   :  { %p110_p5 = por %p109_p4, %p108_p3 }
  0x2c   :  { %p111_p6 = pnand %p110_p5, %p104_p2 }
  0x2e   :  { %114 = shalt.err (!%p111_p6)
}
  0x2f   :  { %s115_s8 = scalar_lea.hbm %s187_s2, 128 }
  0x30   :  { %p116_p7 = scmp.ne.s32.totalorder %s187_s2, %s115_s8  ;;  %p119_p8 = scmp.lt.u32.totalorder %s115_s8, %s187_s2 }
  0x32   :  { %p121_p9 = pnand %p119_p8, %p116_p7 }
  0x34   :  { %124 = shalt.err (!%p121_p9)
}
  0x35   :  { %49 = dma.vmem_to_hbm [thread:$0]  %s47_s5, 128, %s187_s2, [#allocation4]  }
  0x36   :  { %129 = dma.done.wait [#allocation4], 128  }
  0x37   :  { %130 = vsyncadd [#allocation4], 4294967168 }
  0x38   :  { %53 = vsyncpa [#allocation3], 1 }
  0x39   :  { %54 = vsyncpa [#allocation6], 1 }
  0x3a   :  { %55 = vsyncpa [#allocation4], 1 }

</bundles_post_ra>
